<compile_context>
chip_gen: v6e
topology: v6e:2x2x1
jax: 0.10.0
libtpu: 0.0.40
codegen_flags: <defaults>
</compile_context>

<pallas_src>
import jax
import jax.numpy as jnp
from jax.experimental import pallas as pl
from jax.experimental.pallas import tpu as pltpu


def _identity_copy_kernel(r_ref, o_ref, sem):
    # Single HBM->HBM DMA identity copy.  No TensorCore vld/vst in the loop,
    # no per-step pipeline overhead; the DMA engine saturates HBM bandwidth.
    cp = pltpu.make_async_copy(r_ref, o_ref, sem)
    cp.start()
    cp.wait()


def relevance_propagation_identity(a: jax.Array, r: jax.Array,
                                   scale: bool = False, *,
                                   materialize: bool = False) -> jax.Array:
    """LRP through an Identity layer: relevance passes through unchanged.

    `a` and `scale` are accepted for signature fidelity but unused.

    Default (`materialize=False`) is the zero-cost path: returns `r` directly
    with no HBM traffic at all.  Set `materialize=True` to force a fresh
    output buffer produced by the Pallas kernel (one HBM->HBM DMA).
    """
    del a, scale
    if not materialize or r.size == 0:
        # Zero-cost pass-through: the op is a pure identity.
        return r

    return pl.pallas_call(
        _identity_copy_kernel,
        out_shape=jax.ShapeDtypeStruct(r.shape, r.dtype),
        in_specs=[pl.BlockSpec(memory_space=pl.ANY)],
        out_specs=pl.BlockSpec(memory_space=pl.ANY),
        scratch_shapes=[pltpu.SemaphoreType.DMA(())],
        cost_estimate=pl.CostEstimate(
            flops=0,
            transcendentals=0,
            bytes_accessed=2 * int(r.size) * r.dtype.itemsize,
        ),
    )(r)


if __name__ == "__main__":
    key = jax.random.PRNGKey(0)
    k_a, k_r, k_r2 = jax.random.split(key, 3)

    # Activations (unused by the identity layer) and relevance from above.
    N, C, H, W = 2, 4, 16, 16
    a = jax.random.normal(k_a, (N, C, H, W), dtype=jnp.float32)
    r = jax.random.normal(k_r, (N, C * H * W), dtype=jnp.float32)

    # Zero-cost default path.
    out_fast = jax.block_until_ready(relevance_propagation_identity(a, r))
    assert out_fast.shape == r.shape and out_fast.dtype == r.dtype
    assert bool(jnp.array_equal(out_fast, r))

    # Materialized path exercising the Pallas HBM->HBM DMA kernel.
    out = jax.block_until_ready(
        relevance_propagation_identity(a, r, materialize=True))
    assert out.shape == r.shape and out.dtype == r.dtype
    assert bool(jnp.array_equal(out, r))

    # Ragged shape (not a multiple of 128) -- no padding/slicing needed,
    # the DMA copies the array as-is.
    r2 = jax.random.normal(k_r2, (2, 300), dtype=jnp.float32)
    out2 = jax.block_until_ready(
        relevance_propagation_identity(a, r2, materialize=True))
    assert out2.shape == r2.shape and out2.dtype == r2.dtype
    assert bool(jnp.array_equal(out2, r2))

    print("KERNEL_OK")
</pallas_src>

<mosaic_0001>
module attributes {stable_mosaic.version = 11 : i64} {
  func.func @_identity_copy_kernel(%arg0: memref<2x1024xf32, #tpu.memory_space<any>>, %arg1: memref<2x1024xf32, #tpu.memory_space<any>>, %arg2: memref<!tpu.dma_semaphore, #tpu.memory_space<semaphore_mem>>) attributes {dimension_semantics = [], scalar_prefetch = 0 : i64, scratch_operands = 1 : i64, tpu.core_type = #tpu.core_type<tc>} {
    tpu.enqueue_dma source(%arg0 : memref<2x1024xf32, #tpu.memory_space<any>>) target(%arg1 : memref<2x1024xf32, #tpu.memory_space<any>>) target_semaphore(%arg2 : memref<!tpu.dma_semaphore, #tpu.memory_space<semaphore_mem>>)
    tpu.wait_dma2 semaphore(%arg2 : memref<!tpu.dma_semaphore, #tpu.memory_space<semaphore_mem>>) src(%arg0 : memref<2x1024xf32, #tpu.memory_space<any>>) dst(%arg1 : memref<2x1024xf32, #tpu.memory_space<any>>)
    return
  }
}

</mosaic_0001>

<bundles_post_ra>
// kernel: tpu_custom_call.1
= control target key start
LH: loop header
LB: loop body
LE: loop exit
PB: predicated region body
PF: predicated region fallthrough
CT: control target
= control target key end

     0   :  { %s29_s6 = smov [#allocation2]   ;;  %s30_s7 = smov 131072   ;;  %s48_s0 = inlined_call_operand.hbm [shape: f32[2,1024], index: 0, kind: input, shape index: {}]   ;;  %s49_s1 = inlined_call_operand.hbm [shape: f32[2,1024], index: 1, kind: output, shape index: {}]  }
   0x1   :  { %s31_s8 = smov 0  }
   0x2   :  { %12 = dma.general %s48_s0, 256, %s49_s1, %s29_s6, %s30_s7, [#allocation4], %s31_s8, 0  }
   0x3   :  { %27 = dma.done.wait [#allocation2], 256 }
   0x4   :  { %28 = vsyncadd [#allocation2], 4294967040 }
   0x5   :  { %17 = vsyncmov [#allocation2] }
   0x8   :  { %s18_s13 = vpop.sfrf %17 }
   0x9   :  { %p23_p0 = scmp.ne.s32.totalorder %s18_s13, 0 }
   0xb   :  { %22 = shalt.err (%p23_p0)  }

</bundles_post_ra>
